<compile_context>
chip_gen: v6e
topology: v6e:2x2x1
jax: 0.10.0
libtpu: 0.0.40
codegen_flags: <defaults>
</compile_context>

<pallas_src>
import jax
import jax.numpy as jnp
from jax.experimental import pallas as pl
from jax.experimental.pallas import tpu as pltpu


def _round_up(x, m):
    return (x + m - 1) // m * m


_TM_MAX = 8192       # max batch-tile rows (VMEM-safe on every generation)
_MIN_TILES = 4       # target tile count so v7x's two TCs both get work


def _pick_tm(batch):
    # Round the batch tile up to a multiple of 128 (lane-dense output store),
    # cap at _TM_MAX, and for large batches keep at least _MIN_TILES tiles.
    tm = _round_up(pl.cdiv(batch, _MIN_TILES), 128)
    return int(min(_TM_MAX, max(128, tm)))


def fm_kernel(ue_ref, ie_ref, w_ref, b_ref, out_ref):
    ue = ue_ref[...]                      # (TM, E) f32 user-embedding tile
    ie = ie_ref[...]                      # (TM, E) f32 item-embedding tile
    w = w_ref[...]                        # (4, E)  stacked weights (resident)
    wlu = w[0:1, :]                       # linear weight, user half
    wli = w[1:2, :]                       # linear weight, item half
    wfu = w[2:3, :]                       # fm weight, user half
    wfi = w[3:4, :]                       # fm weight, item half

    # linear part: x @ W_lin^T == sum(ue*wlu, -1) + sum(ie*wli, -1)
    lin = jnp.sum(ue * wlu + ie * wli, axis=-1)              # (TM,)
    # fm part: s = x @ W_fm^T ; q = (x*x) @ W_fm^T ; fm = 0.5*(s^2 - q)
    s = jnp.sum(ue * wfu + ie * wfi, axis=-1)                # (TM,)
    q = jnp.sum(ue * ue * wfu + ie * ie * wfi, axis=-1)      # (TM,)

    out = lin + b_ref[0] + 0.5 * (s * s - q)                 # (TM,)
    out_ref[...] = out.reshape(1, 1, -1)                     # lane-dense store


def fm_forward(user_ids, item_ids, params, *, tm=None):
    # Embedding lookups are pure gathers; done in plain JAX glue.
    ue = jnp.take(params["user_embedding"], user_ids, axis=0)
    ie = jnp.take(params["item_embedding"], item_ids, axis=0)
    ue = ue.astype(jnp.float32)
    ie = ie.astype(jnp.float32)

    B, E = ue.shape
    if tm is None:
        tm = _pick_tm(B)
    num_tiles = int(pl.cdiv(B, tm))       # tail tile may be partial (no pad)

    # Split the concat([user, item]) weights into halves and stack into one
    # (4, E) operand -> no in-kernel concat, single resident weight tile.
    w_lin = params["w_linear"].reshape(2 * E).astype(jnp.float32)
    w_fm = params["w_fm"].reshape(2 * E).astype(jnp.float32)
    w = jnp.stack([w_lin[:E], w_lin[E:], w_fm[:E], w_fm[E:]], axis=0)  # (4, E)
    bias = params["b_linear"].reshape(1).astype(jnp.float32)

    emb_spec = pl.BlockSpec((tm, E), lambda i: (i, 0))        # batch-tiled
    w_spec = pl.BlockSpec((4, E), lambda i: (0, 0))           # VMEM-resident

    out = pl.pallas_call(
        fm_kernel,
        out_shape=jax.ShapeDtypeStruct((num_tiles, 1, tm), jnp.float32),
        grid=(num_tiles,),
        in_specs=[
            emb_spec, emb_spec, w_spec,
            pl.BlockSpec(memory_space=pltpu.MemorySpace.SMEM),   # scalar bias
        ],
        out_specs=pl.BlockSpec((1, 1, tm), lambda i: (i, 0, 0)),
        compiler_params=pltpu.CompilerParams(
            dimension_semantics=("parallel",),       # shard across v7x TCs
            vmem_limit_bytes=32 * 1024 * 1024),
    )(ue, ie, w, bias)

    # Drop the (garbage) tail-tile rows; matches output.squeeze() in PyTorch.
    return out.reshape(num_tiles * tm)[:B]


def init_params(key, num_users, num_items, embedding_dim):
    """Deterministic synthetic params with PyTorch-like init."""
    k_ue, k_ie, k_wl, k_bl, k_wf = jax.random.split(key, 5)
    e2 = 2 * embedding_dim
    bound = 1.0 / jnp.sqrt(jnp.float32(e2))
    return {
        # nn.Embedding default init ~ N(0, 1)
        "user_embedding": jax.random.normal(
            k_ue, (num_users, embedding_dim), jnp.float32),
        "item_embedding": jax.random.normal(
            k_ie, (num_items, embedding_dim), jnp.float32),
        # nn.Linear(2E, 1, bias=True): U(-1/sqrt(2E), 1/sqrt(2E))
        "w_linear": jax.random.uniform(k_wl, (1, e2), jnp.float32, -bound, bound),
        "b_linear": jax.random.uniform(k_bl, (1,), jnp.float32, -bound, bound),
        # nn.Linear(2E, 1, bias=False)
        "w_fm": jax.random.uniform(k_wf, (1, e2), jnp.float32, -bound, bound),
    }


def reference_forward(user_ids, item_ids, params):
    """Pure-JAX reference mirroring the PyTorch forward."""
    ue = jnp.take(params["user_embedding"], user_ids, axis=0)
    ie = jnp.take(params["item_embedding"], item_ids, axis=0)
    x = jnp.concatenate([ue, ie], axis=1)
    linear_part = x @ params["w_linear"].T + params["b_linear"]        # (B,1)
    fm_x = x @ params["w_fm"].T
    fm_x2 = (x * x) @ params["w_fm"].T
    fm_part = 0.5 * jnp.sum(fm_x ** 2 - fm_x2, axis=1, keepdims=True)  # (B,1)
    return (linear_part + fm_part).squeeze()


if __name__ == "__main__":
    num_users, num_items = 20, 30
    embedding_dim = 32
    batch = 8

    root = jax.random.PRNGKey(0)
    k_param, k_uid, k_iid = jax.random.split(root, 3)

    params = init_params(k_param, num_users, num_items, embedding_dim)
    user_ids = jax.random.randint(k_uid, (batch,), 0, num_users, dtype=jnp.int32)
    item_ids = jax.random.randint(k_iid, (batch,), 0, num_items, dtype=jnp.int32)

    out = fm_forward(user_ids, item_ids, params)
    out = jax.block_until_ready(out)

    ref = reference_forward(user_ids, item_ids, params)
    assert out.shape == (batch,), out.shape
    assert jnp.allclose(out, ref, atol=1e-4, rtol=1e-4), (out, ref)

    print("KERNEL_OK")
</pallas_src>

<mosaic_0001>
module attributes {stable_mosaic.version = 11 : i64} {
  func.func @fm_kernel(%arg0: i32, %arg1: memref<128x32xf32, #tpu.memory_space<vmem>>, %arg2: memref<128x32xf32, #tpu.memory_space<vmem>>, %arg3: memref<4x32xf32, #tpu.memory_space<vmem>>, %arg4: memref<1xf32, #tpu.memory_space<smem>>, %arg5: memref<1x1x128xf32, #tpu.memory_space<vmem>>) attributes {dimension_semantics = [#tpu.dimension_semantics<parallel>], iteration_bounds = array<i64: 1>, scalar_prefetch = 0 : i64, scratch_operands = 0 : i64, tpu.core_type = #tpu.core_type<tc>, window_params = [{transform_indices = @transform_0, window_bounds = array<i64: 128, 32>}, {transform_indices = @transform_1, window_bounds = array<i64: 128, 32>}, {pipeline_mode = #tpu.pipeline_mode<synchronous>, transform_indices = @transform_2, window_bounds = array<i64: 4, 32>}, {transform_indices = @transform_3, window_bounds = array<i64: 1>}, {transform_indices = @transform_4, window_bounds = array<i64: 1, 1, 128>}]} {
    %c0 = arith.constant 0 : index
    %c0_0 = arith.constant 0 : index
    %0 = vector.load %arg1[%c0, %c0_0] : memref<128x32xf32, #tpu.memory_space<vmem>>, vector<128x32xf32>
    %c0_1 = arith.constant 0 : index
    %c0_2 = arith.constant 0 : index
    %1 = vector.load %arg2[%c0_1, %c0_2] : memref<128x32xf32, #tpu.memory_space<vmem>>, vector<128x32xf32>
    %c0_3 = arith.constant 0 : index
    %c0_4 = arith.constant 0 : index
    %2 = vector.load %arg3[%c0_3, %c0_4] : memref<4x32xf32, #tpu.memory_space<vmem>>, vector<4x32xf32>
    %3 = vector.extract_strided_slice %2 {offsets = [0, 0], sizes = [1, 32], strides = [1, 1]} : vector<4x32xf32> to vector<1x32xf32>
    %4 = vector.extract_strided_slice %2 {offsets = [1, 0], sizes = [1, 32], strides = [1, 1]} : vector<4x32xf32> to vector<1x32xf32>
    %5 = vector.extract_strided_slice %2 {offsets = [2, 0], sizes = [1, 32], strides = [1, 1]} : vector<4x32xf32> to vector<1x32xf32>
    %6 = vector.extract_strided_slice %2 {offsets = [3, 0], sizes = [1, 32], strides = [1, 1]} : vector<4x32xf32> to vector<1x32xf32>
    %7 = vector.broadcast %3 : vector<1x32xf32> to vector<128x32xf32>
    %8 = arith.mulf %0, %7 : vector<128x32xf32>
    %9 = vector.broadcast %4 : vector<1x32xf32> to vector<128x32xf32>
    %10 = arith.mulf %1, %9 : vector<128x32xf32>
    %11 = arith.addf %8, %10 : vector<128x32xf32>
    %cst = arith.constant dense<0.000000e+00> : vector<128xf32>
    %12 = vector.multi_reduction <add>, %11, %cst [1] : vector<128x32xf32> to vector<128xf32>
    %13 = vector.broadcast %5 : vector<1x32xf32> to vector<128x32xf32>
    %14 = arith.mulf %0, %13 : vector<128x32xf32>
    %15 = vector.broadcast %6 : vector<1x32xf32> to vector<128x32xf32>
    %16 = arith.mulf %1, %15 : vector<128x32xf32>
    %17 = arith.addf %14, %16 : vector<128x32xf32>
    %cst_5 = arith.constant dense<0.000000e+00> : vector<128xf32>
    %18 = vector.multi_reduction <add>, %17, %cst_5 [1] : vector<128x32xf32> to vector<128xf32>
    %19 = arith.mulf %0, %0 : vector<128x32xf32>
    %20 = vector.broadcast %5 : vector<1x32xf32> to vector<128x32xf32>
    %21 = arith.mulf %19, %20 : vector<128x32xf32>
    %22 = arith.mulf %1, %1 : vector<128x32xf32>
    %23 = vector.broadcast %6 : vector<1x32xf32> to vector<128x32xf32>
    %24 = arith.mulf %22, %23 : vector<128x32xf32>
    %25 = arith.addf %21, %24 : vector<128x32xf32>
    %cst_6 = arith.constant dense<0.000000e+00> : vector<128xf32>
    %26 = vector.multi_reduction <add>, %25, %cst_6 [1] : vector<128x32xf32> to vector<128xf32>
    %c0_7 = arith.constant 0 : index
    %27 = memref.load %arg4[%c0_7] : memref<1xf32, #tpu.memory_space<smem>>
    %28 = vector.broadcast %27 : f32 to vector<128xf32>
    %29 = arith.addf %12, %28 : vector<128xf32>
    %30 = arith.mulf %18, %18 : vector<128xf32>
    %31 = arith.subf %30, %26 : vector<128xf32>
    %cst_8 = arith.constant 5.000000e-01 : f32
    %32 = vector.broadcast %cst_8 : f32 to vector<128xf32>
    %33 = arith.mulf %32, %31 : vector<128xf32>
    %34 = arith.addf %29, %33 : vector<128xf32>
    %35 = vector.shape_cast %34 : vector<128xf32> to vector<1x1x128xf32>
    %c0_9 = arith.constant 0 : index
    %c0_10 = arith.constant 0 : index
    %c0_11 = arith.constant 0 : index
    %36 = vector.load %arg5[%c0_9, %c0_10, %c0_11] : memref<1x1x128xf32, #tpu.memory_space<vmem>>, vector<1x1x128xf32>
    tpu.vector_store %arg5[%c0_9, %c0_10, %c0_11], %35 {strides = array<i32>} : memref<1x1x128xf32, #tpu.memory_space<vmem>>, vector<1x1x128xf32>,
    return
  }
  func.func @transform_0(%arg0: i32) -> (i32, i32) {
    %c0_i32 = arith.constant 0 : i32
    %c0_i32_0 = arith.constant 0 : i32
    return %arg0, %c0_i32 : i32, i32
  }
  func.func @transform_1(%arg0: i32) -> (i32, i32) {
    %c0_i32 = arith.constant 0 : i32
    %c0_i32_0 = arith.constant 0 : i32
    return %arg0, %c0_i32 : i32, i32
  }
  func.func @transform_2(%arg0: i32) -> (i32, i32) {
    %c0_i32 = arith.constant 0 : i32
    %c0_i32_0 = arith.constant 0 : i32
    %c0_i32_1 = arith.constant 0 : i32
    return %c0_i32, %c0_i32_0 : i32, i32
  }
  func.func @transform_3(%arg0: i32) -> i32 {
    %c0_i32 = arith.constant 0 : i32
    %c0_i32_0 = arith.constant 0 : i32
    return %c0_i32 : i32
  }
  func.func @transform_4(%arg0: i32) -> (i32, i32, i32) {
    %c0_i32 = arith.constant 0 : i32
    %c0_i32_0 = arith.constant 0 : i32
    %c0_i32_1 = arith.constant 0 : i32
    return %arg0, %c0_i32, %c0_i32_0 : i32, i32, i32
  }
}

</mosaic_0001>

<bundles_post_ra>
// kernel: tpu_custom_call.1
= control target key start
LH: loop header
LB: loop body
LE: loop exit
PB: predicated region body
PF: predicated region fallthrough
CT: control target
= control target key end

     0   :  { %10 = vsyncpa [#allocation4], 0  ;;  %s1131_s0 = inlined_call_operand.hbm [shape: f32[8,32], index: 0, kind: input, shape index: {}]   ;;  %s1132_s1 = inlined_call_operand.hbm [shape: f32[8,32], index: 1, kind: input, shape index: {}]   ;;  %s1133_s2 = inlined_call_operand.vmem [shape: f32[4,32], index: 2, kind: input, shape index: {}]   ;;  %s1134_s3 = inlined_call_operand.<no memory space> [shape: f32[1], index: 3, kind: input, shape index: {}]   ;;  %s1135_s4 = inlined_call_operand.hbm [shape: f32[1,1,128], index: 4, kind: output, shape index: {}]  }
   0x1   :  { %11 = vsyncpa [#allocation7], 0 }
   0x2   :  { %12 = vsyncpa [#allocation5], 0 }
   0x3   :  { %17 = vsyncadd [#allocation4], 1920  ;;  %s715_s15 = smov [#allocation3]  }
   0x4   :  { %s18_s16 = sshll.u32 %s715_s15, 4  ;;  %s19_s16 = int_to_ptr.vmem [resolvable:$true] %s18_s16 }
   0x5   :  { %s657_s17 = scalar_lea.vmem %s19_s16, 128  ;;  %s661_s18 = scalar_lea.vmem %s19_s16, 2048 }
   0x6   :  { %p658_p0 = scmp.ne.s32.totalorder %s19_s16, %s657_s17  ;;  %p662_p1 = scmp.lt.s32.totalorder %s19_s16, %s19_s16 }
   0x7   :  { %p663_p2 = scmp.lt.s32.totalorder %s661_s18, %s657_s17 }
   0x9   :  { %p664_p3 = por %p663_p2, %p662_p1 }
   0xb   :  { %p665_p4 = pnand %p664_p3, %p658_p0 }
   0xd   :  { %668 = shalt.err (!%p665_p4)
}
   0xe   :  { %s716_s19 = smov 128   ;;  %s717_s20 = smov 8  }
   0xf   :  { %24 = dma.hbm_to_vmem [thread:$0]  %s1131_s0, 128, %s19_s16, [#allocation4], %s716_s19, %s716_s19, %s717_s20  }
  0x10   :  { %29 = vsyncadd [#allocation7], 1920  ;;  %s718_s23 = smov [#allocation6]  }
  0x11   :  { %s30_s24 = sshll.u32 %s718_s23, 4  ;;  %s31_s24 = int_to_ptr.vmem [resolvable:$true] %s30_s24 }
  0x12   :  { %s677_s25 = scalar_lea.vmem %s31_s24, 128  ;;  %s681_s26 = scalar_lea.vmem %s31_s24, 2048 }
  0x13   :  { %p678_p5 = scmp.ne.s32.totalorder %s31_s24, %s677_s25  ;;  %p682_p6 = scmp.lt.s32.totalorder %s31_s24, %s31_s24 }
  0x14   :  { %p683_p7 = scmp.lt.s32.totalorder %s681_s26, %s677_s25 }
  0x16   :  { %p684_p8 = por %p683_p7, %p682_p6 }
  0x18   :  { %p685_p9 = pnand %p684_p8, %p678_p5 }
  0x1a   :  { %688 = shalt.err (!%p685_p9)
}
  0x1b   :  { %36 = dma.hbm_to_vmem [thread:$0]  %s1132_s1, 128, %s31_s24, [#allocation7], %s716_s19, %s716_s19, %s717_s20  }
  0x1c   :  { %709 = dma.done.wait [#allocation4], 2048  }
  0x1d   :  { %710 = vsyncadd [#allocation4], 4294965248 }
  0x1e   :  { %711 = dma.done.wait [#allocation7], 2048  }
  0x1f   :  { %712 = vsyncadd [#allocation7], 4294965248  ;;  %v80_v0 = vlaneseq  ;;  %v758_v6 = vld [vmem:[#allocation3 + $0x10] sm:$0xff]  ;;  %v79_v8 = vld [vmem:[%s1133_s2] sm:$0xf]  ;;  %vm136_vm0 = vcmask 261120  }
  0x20   :  { %v760_v7 = vld [vmem:[#allocation6 + $0x10] sm:$0xff]  ;;  %v47_v11 = vld [vmem:[#allocation3] sm:$0xff]  ;;  %v769_v13 = vld [vmem:[#allocation3 + $0x18] sm:$0xff]  ;;  %v291_v14 = vmul.f32 %v758_v6, %v758_v6  ;;  %vm526_vm1 = vcmask 130112   ;;  %vm533_vm2 = vcmask 195712   ;;  %vm540_vm3 = vcmask 261312  }
  0x21   :  { %v752_v1 = vshrl.u32 %v80_v0, 7  ;;  %v63_v12 = vld [vmem:[#allocation6] sm:$0xff]  ;;  %v323_v15 = vmul.f32 %v760_v7, %v760_v7  ;;  %v775_v16 = vld [vmem:[#allocation6 + $0x18] sm:$0xff]  ;;  %v48_v17 = vld [vmem:[#allocation3 + $0x8] sm:$0xff]  ;;  %v289_v19 = vmul.f32 %v47_v11, %v47_v11  ;;  %v292_v57 = vmul.f32 %v769_v13, %v769_v13 }
  0x22   :  { %v64_v18 = vld [vmem:[#allocation6 + $0x8] sm:$0xff]  ;;  %v321_v20 = vmul.f32 %v63_v12, %v63_v12  ;;  %v290_v33 = vmul.f32 %v48_v17, %v48_v17  ;;  %v795_v39 = vld [vmem:[#allocation3 + $0x20] sm:$0xff]  ;;  %v324_v58 = vmul.f32 %v775_v16, %v775_v16  ;;  %vm547_vm4 = vcmask 326912  }
  0x23   :  { %v187_v2 = vsub.s32 2, %v752_v1  ;;  %v207_v3 = vsub.s32 3, %v752_v1  ;;  %v82_v4 = vsub.s32 0, %v752_v1  ;;  %v102_v5 = vsub.s32 1, %v752_v1  ;;  %v797_v40 = vld [vmem:[#allocation6 + $0x20] sm:$0xff]  ;;  %v818_v59 = vld [vmem:[#allocation3 + $0x28] sm:$0xff] }
  0x24   :  { %v322_v34 = vmul.f32 %v64_v18, %v64_v18  ;;  %vm554_vm5 = vcmask 392512   ;;  %vm561_vm6 = vcmask 458112   ;;  %vm568_vm7 = vcmask 523712  }
  0x25   :  { %v765_v9 = vrot.slane %v79_v8, %v187_v2  ;;  %v767_v10 = vrot.slane %v79_v8, %v207_v3  ;;  %v777_v21 = vrot.slane %v79_v8, %v82_v4  ;;  %v779_v22 = vrot.slane %v79_v8, %v102_v5  ;;  %v68_v2 = vld [vmem:[#allocation6 + $0x28] sm:$0xff]  ;;  %v823_v3 = vld [vmem:[#allocation3 + $0x30] sm:$0xff] }
  0x26   :  { %v825_v4 = vld [vmem:[#allocation6 + $0x30] sm:$0xff]  ;;  %vm575_vm8 = vcmask 589312   ;;  %vm582_vm9 = vcmask 654912   ;;  %vm589_vm10 = vcmask 720512   ;;  %vm596_vm11 = vcmask 786112  }
  0x27   :  { %v191_v23 = vmul.f32 %v765_v9, %v758_v6  ;;  %v211_v24 = vmul.f32 %v767_v10, %v760_v7  ;;  %v189_v25 = vmul.f32 %v765_v9, %v47_v11  ;;  %v209_v26 = vmul.f32 %v767_v10, %v63_v12 }
  0x28   :  { %v192_v27 = vmul.f32 %v765_v9, %v769_v13  ;;  %v212_v28 = vmul.f32 %v767_v10, %v775_v16  ;;  %v190_v29 = vmul.f32 %v765_v9, %v48_v17  ;;  %v210_v30 = vmul.f32 %v767_v10, %v64_v18 }
  0x29   :  { %v227_v31 = vadd.f32 %v211_v24, %v191_v23  ;;  %v225_v32 = vadd.f32 %v209_v26, %v189_v25  ;;  %v305_v37 = vmul.f32 %v289_v19, %v765_v9  ;;  %v337_v38 = vmul.f32 %v321_v20, %v767_v10 }
  0x2a   :  { %v228_v35 = vadd.f32 %v212_v28, %v192_v27  ;;  %v226_v36 = vadd.f32 %v210_v30, %v190_v29  ;;  %v306_v43 = vmul.f32 %v290_v33, %v765_v9  ;;  %v338_v44 = vmul.f32 %v322_v34, %v767_v10 }
  0x2b   :  { %v247_v41 = vsel %vm136_vm0, %v227_v31, 0.0  ;;  %v241_v42 = vsel %vm136_vm0, %v225_v32, 0.0  ;;  %v353_v47 = vadd.f32 %v337_v38, %v305_v37  ;;  %v307_v48 = vmul.f32 %v291_v14, %v765_v9  ;;  %v54_v37 = vld [vmem:[#allocation3 + $0x38] sm:$0xff] }
  0x2c   :  { %248 = vadd.xlane.f32.xlu1 %v247_v41  ;;  %242 = vadd.xlane.f32.xlu0 %v241_v42  ;;  %v250_v45 = vsel %vm136_vm0, %v228_v35, 0.0  ;;  %v244_v46 = vsel %vm136_vm0, %v226_v36, 0.0  ;;  %v354_v49 = vadd.f32 %v338_v44, %v306_v43  ;;  %v339_v50 = vmul.f32 %v323_v15, %v767_v10  ;;  %v70_v38 = vld [vmem:[#allocation6 + $0x38] sm:$0xff]  ;;  %v858_v42 = vld [vmem:[#allocation3 + $0x40] sm:$0xff] }
  0x2d   :  { %v193_v51 = vmul.f32 %v765_v9, %v795_v39  ;;  %v213_v52 = vmul.f32 %v767_v10, %v797_v40  ;;  %v85_v53 = vmul.f32 %v777_v21, %v48_v17  ;;  %v105_v54 = vmul.f32 %v779_v22, %v64_v18  ;;  %v861_v44 = vld [vmem:[#allocation6 + $0x40] sm:$0xff] }
  0x2e   :  { %v369_v55 = vsel %vm136_vm0, %v353_v47, 0.0  ;;  %v355_v56 = vadd.f32 %v339_v50, %v307_v48  ;;  %v372_v60 = vsel %vm136_vm0, %v354_v49, 0.0  ;;  %v84_v62 = vmul.f32 %v777_v21, %v47_v11 }
  0x2f   :  { %v229_v61 = vadd.f32 %v213_v52, %v193_v51  ;;  %v104_v63 = vmul.f32 %v779_v22, %v63_v12  ;;  %v121_v5 = vadd.f32 %v105_v54, %v85_v53  ;;  %v194_v8 = vmul.f32 %v765_v9, %v818_v59 }
  0x30   :  { %251 = vadd.xlane.f32.xlu1 %v250_v45  ;;  %245 = vadd.xlane.f32.xlu0 %v244_v46  ;;  %v375_v14 = vsel %vm136_vm0, %v355_v56, 0.0  ;;  %v308_v15 = vmul.f32 %v292_v57, %v765_v9  ;;  %v340_v17 = vmul.f32 %v324_v58, %v767_v10  ;;  %v214_v11 = vmul.f32 %v767_v10, %v68_v2  ;;  %v875_v56 = vld [vmem:[#allocation6 + $0x48] sm:$0xff] }
  0x31   :  { %v253_v12 = vsel %vm136_vm0, %v229_v61, 0.0  ;;  %v120_v18 = vadd.f32 %v104_v63, %v84_v62  ;;  %v195_v19 = vmul.f32 %v765_v9, %v823_v3  ;;  %v215_v20 = vmul.f32 %v767_v10, %v825_v4 }
  0x32   :  { %v86_v23 = vmul.f32 %v777_v21, %v758_v6  ;;  %v293_v24 = vmul.f32 %v795_v39, %v795_v39  ;;  %v325_v25 = vmul.f32 %v797_v40, %v797_v40  ;;  %v140_v26 = vsel %vm136_vm0, %v121_v5, 0.0 }
  0x33   :  { %v356_v27 = vadd.f32 %v340_v17, %v308_v15  ;;  %v230_v28 = vadd.f32 %v214_v11, %v194_v8  ;;  %v106_v29 = vmul.f32 %v779_v22, %v760_v7  ;;  %v137_v30 = vsel %vm136_vm0, %v120_v18, 0.0  ;;  %v891_v15 = vld [vmem:[#allocation6 + $0x50] sm:$0xff] }
  0x34   :  { %373 = vadd.xlane.f32.xlu1 %v372_v60  ;;  %370 = vadd.xlane.f32.xlu0 %v369_v55  ;;  %v231_v31 = vadd.f32 %v215_v20, %v195_v19  ;;  %v87_v6 = vmul.f32 %v777_v21, %v769_v13  ;;  %v107_v32 = vmul.f32 %v779_v22, %v775_v16  ;;  %v873_v55 = vld [vmem:[#allocation3 + $0x48] sm:$0xff]  ;;  %vm603_vm12 = vcmask 851712  }
  0x35   :  { %v294_v33 = vmul.f32 %v818_v59, %v818_v59  ;;  %v309_v34 = vmul.f32 %v293_v24, %v765_v9  ;;  %v341_v35 = vmul.f32 %v325_v25, %v767_v10  ;;  %v326_v36 = vmul.f32 %v68_v2, %v68_v2 }
  0x36   :  { %v378_v7 = vsel %vm136_vm0, %v356_v27, 0.0  ;;  %v256_v41 = vsel %vm136_vm0, %v230_v28, 0.0  ;;  %v122_v13 = vadd.f32 %v106_v29, %v86_v23  ;;  %v259_v16 = vsel %vm136_vm0, %v231_v31, 0.0 }
  0x37   :  { %v123_v43 = vadd.f32 %v107_v32, %v87_v6  ;;  %v295_v45 = vmul.f32 %v823_v3, %v823_v3  ;;  %v327_v46 = vmul.f32 %v825_v4, %v825_v4  ;;  %v310_v47 = vmul.f32 %v294_v33, %v765_v9 }
  0x38   :  { %376 = vadd.xlane.f32.xlu1 %v375_v14  ;;  %254 = vadd.xlane.f32.xlu0 %v253_v12  ;;  %v196_v48 = vmul.f32 %v765_v9, %v54_v37  ;;  %v216_v49 = vmul.f32 %v767_v10, %v70_v38  ;;  %v296_v50 = vmul.f32 %v54_v37, %v54_v37  ;;  %v143_v57 = vsel %vm136_vm0, %v122_v13, 0.0  ;;  %v889_v14 = vld [vmem:[#allocation3 + $0x50] sm:$0xff] }
  0x39   :  { %v357_v51 = vadd.f32 %v341_v35, %v309_v34  ;;  %v342_v52 = vmul.f32 %v326_v36, %v767_v10  ;;  %v197_v53 = vmul.f32 %v765_v9, %v858_v42  ;;  %v328_v54 = vmul.f32 %v70_v38, %v70_v38 }
  0x3a   :  { %v217_v58 = vmul.f32 %v767_v10, %v861_v44  ;;  %v88_v60 = vmul.f32 %v777_v21, %v795_v39  ;;  %v108_v61 = vmul.f32 %v779_v22, %v797_v40  ;;  %v89_v62 = vmul.f32 %v777_v21, %v818_v59 }
  0x3b   :  { %v109_v63 = vmul.f32 %v779_v22, %v68_v2  ;;  %v311_v5 = vmul.f32 %v295_v45, %v765_v9  ;;  %v343_v8 = vmul.f32 %v327_v46, %v767_v10  ;;  %v312_v17 = vmul.f32 %v296_v50, %v765_v9  ;;  %v937_v50 = vld [vmem:[#allocation3 + $0x68] sm:$0xff] }
  0x3c   :  { %141 = vadd.xlane.f32.xlu1 %v140_v26  ;;  %138 = vadd.xlane.f32.xlu0 %v137_v30  ;;  %v344_v39 = vmul.f32 %v328_v54, %v767_v10  ;;  %v198_v40 = vmul.f32 %v765_v9, %v873_v55  ;;  %v218_v59 = vmul.f32 %v767_v10, %v875_v56  ;;  %v146_v2 = vsel %vm136_vm0, %v123_v43, 0.0  ;;  %v929_v43 = vld [vmem:[#allocation3 + $0x58] sm:$0xff] }
  0x3d   :  { %v232_v11 = vadd.f32 %v216_v49, %v196_v48  ;;  %v381_v12 = vsel %vm136_vm0, %v357_v51, 0.0  ;;  %v358_v18 = vadd.f32 %v342_v52, %v310_v47  ;;  %v199_v19 = vmul.f32 %v765_v9, %v889_v14  ;;  %v933_v48 = vld [vmem:[#allocation6 + $0x58] sm:$0xff] }
  0x3e   :  { %v219_v20 = vmul.f32 %v767_v10, %v891_v15  ;;  %v233_v23 = vadd.f32 %v217_v58, %v197_v53  ;;  %v124_v24 = vadd.f32 %v108_v61, %v88_v60  ;;  %v125_v25 = vadd.f32 %v109_v63, %v89_v62  ;;  %v950_v58 = vld [vmem:[#allocation3 + $0x70] sm:$0xff] }
  0x3f   :  { %v359_v26 = vadd.f32 %v343_v8, %v311_v5  ;;  %v360_v27 = vadd.f32 %v344_v39, %v312_v17  ;;  %v234_v28 = vadd.f32 %v218_v59, %v198_v40  ;;  %v90_v29 = vmul.f32 %v777_v21, %v823_v3  ;;  %v952_v60 = vld [vmem:[#allocation6 + $0x70] sm:$0xff]  ;;  %v59_v17 = vld [vmem:[#allocation3 + $0x60] sm:$0xff] }
  0x40   :  { %379 = vadd.xlane.f32.xlu1 %v378_v7  ;;  %257 = vadd.xlane.f32.xlu0 %v256_v41  ;;  %v110_v30 = vmul.f32 %v779_v22, %v825_v4  ;;  %v91_v31 = vmul.f32 %v777_v21, %v54_v37  ;;  %v111_v6 = vmul.f32 %v779_v22, %v70_v38  ;;  %v384_v34 = vsel %vm136_vm0, %v358_v18, 0.0 }
  0x41   :  { %v297_v32 = vmul.f32 %v858_v42, %v858_v42  ;;  %v329_v33 = vmul.f32 %v861_v44, %v861_v44  ;;  %v262_v35 = vsel %vm136_vm0, %v232_v11, 0.0  ;;  %v235_v3 = vadd.f32 %v219_v20, %v199_v19 }
  0x42   :  { %v265_v36 = vsel %vm136_vm0, %v233_v23, 0.0  ;;  %v149_v4 = vsel %vm136_vm0, %v124_v24, 0.0  ;;  %v152_v37 = vsel %vm136_vm0, %v125_v25, 0.0  ;;  %v298_v38 = vmul.f32 %v873_v55, %v873_v55 }
  0x43   :  { %v387_v7 = vsel %vm136_vm0, %v359_v26, 0.0  ;;  %v924_v41 = vsel %vm136_vm0, %v360_v27, 0.0  ;;  %v927_v13 = vsel %vm136_vm0, %v234_v28, 0.0  ;;  %v127_v45 = vadd.f32 %v111_v6, %v91_v31 }
  0x44   :  { %260 = vadd.xlane.f32.xlu1 %v259_v16  ;;  %144 = vadd.xlane.f32.xlu0 %v143_v57  ;;  %v126_v16 = vadd.f32 %v110_v30, %v90_v29  ;;  %v313_v46 = vmul.f32 %v297_v32, %v765_v9  ;;  %v345_v47 = vmul.f32 %v329_v33, %v767_v10  ;;  %v940_v51 = vsel %vm136_vm0, %v235_v3, 0.0  ;;  %v948_v57 = vld [vmem:[#allocation6 + $0x68] sm:$0xff]  ;;  %v62_v33 = vld [vmem:[#allocation3 + $0x78] sm:$0xff] }
  0x45   :  { %v299_v49 = vmul.f32 %v889_v14, %v889_v14  ;;  %v330_v52 = vmul.f32 %v875_v56, %v875_v56  ;;  %v331_v53 = vmul.f32 %v891_v15, %v891_v15  ;;  %v300_v54 = vmul.f32 %v929_v43, %v929_v43 }
  0x46   :  { %v955_v61 = vmul.f32 %v298_v38, %v765_v9  ;;  %v200_v62 = vmul.f32 %v765_v9, %v929_v43  ;;  %v332_v5 = vmul.f32 %v933_v48, %v933_v48  ;;  %v220_v8 = vmul.f32 %v767_v10, %v933_v48 }
  0x47   :  { %v315_v63 = vmul.f32 %v299_v49, %v765_v9  ;;  %v347_v39 = vmul.f32 %v331_v53, %v767_v10  ;;  %v316_v40 = vmul.f32 %v300_v54, %v765_v9  ;;  %v202_v59 = vmul.f32 %v765_v9, %v937_v50 }
  0x48   :  { %147 = vadd.xlane.f32.xlu1 %v146_v2  ;;  %382 = vadd.xlane.f32.xlu0 %v381_v12  ;;  %v75_v2 = vld [vmem:[#allocation6 + $0x60] sm:$0xff]  ;;  %v348_v11 = vmul.f32 %v332_v5, %v767_v10  ;;  %v222_v12 = vmul.f32 %v767_v10, %v948_v57  ;;  %v203_v18 = vmul.f32 %v765_v9, %v950_v58  ;;  %v155_v20 = vsel %vm136_vm0, %v126_v16, 0.0 }
  0x49   :  { %v223_v19 = vmul.f32 %v767_v10, %v952_v60  ;;  %v361_v23 = vadd.f32 %v345_v47, %v313_v46  ;;  %v346_v24 = vmul.f32 %v330_v52, %v767_v10  ;;  %v363_v25 = vadd.f32 %v347_v39, %v315_v63 }
  0x4a   :  { %v978_v26 = vmul.f32 %v765_v9, %v59_v17  ;;  %v364_v27 = vadd.f32 %v348_v11, %v316_v40  ;;  %v238_v28 = vadd.f32 %v222_v12, %v202_v59  ;;  %v980_v30 = vadd.f32 %v220_v8, %v200_v62 }
  0x4b   :  { %v239_v29 = vadd.f32 %v223_v19, %v203_v18  ;;  %v983_v31 = vmul.f32 %v767_v10, %v75_v2  ;;  %v986_v6 = vsel %vm136_vm0, %v363_v25, 0.0  ;;  %v301_v32 = vmul.f32 %v59_v17, %v59_v17 }
  0x4c   :  { %385 = vadd.xlane.f32.xlu1 %v384_v34  ;;  %263 = vadd.xlane.f32.xlu0 %v262_v35  ;;  %v78_v34 = vld [vmem:[#allocation6 + $0x78] sm:$0xff]  ;;  %v989_v35 = vsel %vm136_vm0, %v364_v27, 0.0  ;;  %v992_v3 = vsel %vm136_vm0, %v238_v28, 0.0  ;;  %v158_v38 = vsel %vm136_vm0, %v127_v45, 0.0  ;;  %v92_v16 = vmul.f32 %v777_v21, %v858_v42 }
  0x4d   :  { %v317_v46 = vmul.f32 %v301_v32, %v765_v9  ;;  %v302_v47 = vmul.f32 %v937_v50, %v937_v50  ;;  %v334_v52 = vmul.f32 %v948_v57, %v948_v57  ;;  %v204_v53 = vmul.f32 %v765_v9, %v62_v33 }
  0x4e   :  { %v303_v42 = vmul.f32 %v950_v58, %v950_v58  ;;  %v335_v54 = vmul.f32 %v952_v60, %v952_v60  ;;  %v96_v8 = vmul.f32 %v777_v21, %v59_v17  ;;  %v116_v59 = vmul.f32 %v779_v22, %v75_v2 }
  0x4f   :  { %v318_v45 = vmul.f32 %v302_v47, %v765_v9  ;;  %v350_v63 = vmul.f32 %v334_v52, %v767_v10  ;;  %v304_v19 = vmul.f32 %v62_v33, %v62_v33  ;;  %v336_v27 = vmul.f32 %v78_v34, %v78_v34 }
  0x50   :  { %266 = vadd.xlane.f32.xlu1 %v265_v36  ;;  %150 = vadd.xlane.f32.xlu0 %v149_v4  ;;  %v995_v36 = vsel %vm136_vm0, %v239_v29, 0.0  ;;  %v333_v4 = vmul.f32 %v75_v2, %v75_v2  ;;  %v319_v39 = vmul.f32 %v303_v42, %v765_v9  ;;  %v351_v40 = vmul.f32 %v335_v54, %v767_v10 }
  0x51   :  { %v366_v12 = vadd.f32 %v350_v63, %v318_v45  ;;  %v132_v17 = vadd.f32 %v116_v59, %v96_v8  ;;  %v117_v28 = vmul.f32 %v779_v22, %v948_v57  ;;  %v99_v2 = vmul.f32 %v777_v21, %v62_v33 }
  0x52   :  { %v349_v49 = vmul.f32 %v333_v4, %v767_v10  ;;  %v367_v25 = vadd.f32 %v351_v40, %v319_v39  ;;  %v352_v4 = vmul.f32 %v336_v27, %v767_v10  ;;  %v118_v57 = vmul.f32 %v779_v22, %v952_v60 }
  0x53   :  { %v173_v32 = vsel %vm136_vm0, %v132_v17, 0.0  ;;  %v94_v45 = vmul.f32 %v777_v21, %v889_v14  ;;  %v1073_v54 = vand.u32 127, %v80_v0  ;;  %v1079_v59 = vstv %s1134_s3  ;;  %s719_s3 = smov [#allocation8]  }
  0x54   :  { %153 = vadd.xlane.f32.xlu1 %v152_v37  ;;  %388 = vadd.xlane.f32.xlu0 %v387_v7  ;;  %v224_v37 = vmul.f32 %v767_v10, %v78_v34  ;;  %v112_v7 = vmul.f32 %v779_v22, %v861_v44  ;;  %v365_v62 = vadd.f32 %v349_v49, %v317_v46  ;;  %v393_v44 = vsel %vm136_vm0, %v361_v23, 0.0  ;;  %s634_s30 = sshll.u32 %s719_s3, 4  ;;  %s635_s30 = int_to_ptr.vmem [resolvable:$true] %s634_s30 }
  0x55   :  { %v320_v23 = vmul.f32 %v304_v19, %v765_v9  ;;  %v411_v29 = vsel %vm136_vm0, %v367_v25, 0.0  ;;  %v362_v46 = vadd.f32 %v346_v24, %v955_v61  ;;  %v98_v9 = vmul.f32 %v777_v21, %v950_v58  ;;  %s689_s5 = scalar_lea.vmem %s635_s30, 16  ;;  %s693_s6 = scalar_lea.vmem %s635_s30, 32 }
  0x56   :  { %v240_v5 = vadd.f32 %v224_v37, %v204_v53  ;;  %v405_v11 = vsel %vm136_vm0, %v365_v62, 0.0  ;;  %v274_v10 = vsel %vm136_vm0, %v980_v30, 0.0  ;;  %v113_v61 = vmul.f32 %v779_v22, %v875_v56  ;;  %p690_p10 = scmp.ne.s32.totalorder %s635_s30, %s689_s5  ;;  %p694_p11 = scmp.lt.s32.totalorder %s635_s30, %s635_s30 }
  0x57   :  { %v368_v33 = vadd.f32 %v352_v4, %v320_v23  ;;  %v134_v52 = vadd.f32 %v118_v57, %v98_v9  ;;  %v396_v24 = vsel %vm136_vm0, %v362_v46, 0.0  ;;  %v521_v39 = vadd.s32 4294967288, %v1073_v54  ;;  %p695_p12 = scmp.lt.s32.totalorder %s693_s6, %s689_s5 }
  0x58   :  { %391 = vadd.xlane.f32.xlu1 %v924_v41  ;;  %269 = vadd.xlane.f32.xlu0 %v927_v13  ;;  %v286_v18 = vsel %vm136_vm0, %v240_v5, 0.0  ;;  %v97_v41 = vmul.f32 %v777_v21, %v937_v50  ;;  %v408_v13 = vsel %vm136_vm0, %v366_v12, 0.0  ;;  %v119_v50 = vmul.f32 %v779_v22, %v78_v34 }
  0x59   :  { %v414_v58 = vsel %vm136_vm0, %v368_v33, 0.0  ;;  %v128_v34 = vadd.f32 %v112_v7, %v92_v16  ;;  %v179_v53 = vsel %vm136_vm0, %v134_v52, 0.0  ;;  %v95_v16 = vmul.f32 %v777_v21, %v929_v43  ;;  %p696_p13 = por %p695_p12, %p694_p11 }
  0x5a   :  { %v133_v47 = vadd.f32 %v117_v28, %v97_v41  ;;  %v115_v7 = vmul.f32 %v779_v22, %v933_v48  ;;  %v519_v0 = vsub.s32 %v1073_v54, %v752_v1  ;;  %v535_v9 = vadd.s32 4294967272, %v1073_v54 }
  0x5b   :  { %v161_v30 = vsel %vm136_vm0, %v128_v34, 0.0  ;;  %vm610_vm13 = vcmask 917312   ;;  %vm617_vm14 = vcmask 982912   ;;  %vm624_vm15 = vcmask 1048512   ;;  %p697_p0 = pnand %p696_p13, %p690_p10 }
  0x5c   :  { %272 = vadd.xlane.f32.xlu1 %v940_v51  ;;  %156 = vadd.xlane.f32.xlu0 %v155_v20  ;;  %v135_v51 = vadd.f32 %v119_v50, %v99_v2  ;;  %v93_v20 = vmul.f32 %v777_v21, %v873_v55  ;;  %v176_v49 = vsel %vm136_vm0, %v133_v47, 0.0  ;;  %v237_v55 = vadd.f32 %v983_v31, %v978_v26 }
  0x5d   :  { %v114_v26 = vmul.f32 %v779_v22, %v891_v15  ;;  %v131_v14 = vadd.f32 %v115_v7, %v95_v16 }
  0x5e   :  { %v182_v60 = vsel %vm136_vm0, %v135_v51, 0.0  ;;  %v129_v37 = vadd.f32 %v113_v61, %v93_v20 }
  0x5f   :  { %v130_v31 = vadd.f32 %v114_v26, %v94_v45  ;;  %v170_v15 = vsel %vm136_vm0, %v131_v14, 0.0  ;;  %v542_v45 = vadd.s32 4294967264, %v1073_v54 }
  0x60   :  { %159 = vadd.xlane.f32.xlu1 %v158_v38  ;;  %394 = vadd.xlane.f32.xlu0 %v393_v44  ;;  %v277_v38 = vsel %vm136_vm0, %v237_v55, 0.0  ;;  %v164_v56 = vsel %vm136_vm0, %v129_v37, 0.0 }
  0x61   :  { %v167_v42 = vsel %vm136_vm0, %v130_v31, 0.0 }
  0x64   :  { %397 = vadd.xlane.f32.xlu1 %v396_v24  ;;  %275 = vadd.xlane.f32.xlu0 %v274_v10 }
  0x68   :  { %278 = vadd.xlane.f32.xlu1 %v277_v38  ;;  %162 = vadd.xlane.f32.xlu0 %v161_v30 }
  0x6c   :  { %165 = vadd.xlane.f32.xlu1 %v164_v56  ;;  %400 = vadd.xlane.f32.xlu0 %v986_v6 }
  0x70   :  { %403 = vadd.xlane.f32.xlu1 %v989_v35  ;;  %281 = vadd.xlane.f32.xlu0 %v992_v3 }
  0x74   :  { %284 = vadd.xlane.f32.xlu1 %v995_v36  ;;  %168 = vadd.xlane.f32.xlu0 %v167_v42  ;;  %v549_v42 = vadd.s32 4294967256, %v1073_v54 }
  0x78   :  { %171 = vadd.xlane.f32.xlu1 %v170_v15  ;;  %406 = vadd.xlane.f32.xlu0 %v405_v11  ;;  %v524_v11 = vsub.s32 %v521_v39, %v752_v1 }
  0x7c   :  { %409 = vadd.xlane.f32.xlu1 %v408_v13  ;;  %287 = vadd.xlane.f32.xlu0 %v286_v18 }
  0x80   :  { %412 = vadd.xlane.f32.xlu1 %v411_v29  ;;  %174 = vadd.xlane.f32.xlu0 %v173_v32  ;;  %v528_v32 = vadd.s32 4294967280, %v1073_v54 }
  0x82   :  { %v531_v51 = vsub.s32 %v528_v32, %v752_v1 }
  0x84   :  { %415 = vadd.xlane.f32.xlu1 %v414_v58  ;;  %177 = vadd.xlane.f32.xlu0 %v176_v49 }
  0x88   :  { %183 = vadd.xlane.f32.xlu1 %v182_v60  ;;  %180 = vadd.xlane.f32.xlu0 %v179_v53  ;;  %v538_v60 = vsub.s32 %v535_v9, %v752_v1 }
  0xb5   :  { %v249_v21 = vpop.xlane.xlu1 %248  ;;  %v243_v22 = vpop.xlane.xlu0 %242 }
  0xb6   :  { %v435_v6 = vmul.f32 %v243_v22, %v243_v22  ;;  %v437_v5 = vmul.f32 %v249_v21, %v249_v21  ;;  %v545_v21 = vsub.s32 %v542_v45, %v752_v1 }
  0xb9   :  { %v252_v43 = vpop.xlane.xlu1 %251  ;;  %v246_v48 = vpop.xlane.xlu0 %245 }
  0xba   :  { %v436_v35 = vmul.f32 %v246_v48, %v246_v48  ;;  %v438_v4 = vmul.f32 %v252_v43, %v252_v43 }
  0xbd   :  { %v374_v3 = vpop.xlane.xlu1 %373  ;;  %v371_v36 = vpop.xlane.xlu0 %370 }
  0xbe   :  { %v452_v62 = vsub.f32 %v436_v35, %v374_v3  ;;  %v451_v63 = vsub.f32 %v435_v6, %v371_v36  ;;  %v552_v36 = vsub.s32 %v549_v42, %v752_v1 }
  0xc0   :  { %v468_v19 = vmul.f32 0.5, %v452_v62  ;;  %v467_v25 = vmul.f32 0.5, %v451_v63 }
  0xc1   :  { %v377_v8 = vpop.xlane.xlu1 %376  ;;  %v255_v44 = vpop.xlane.xlu0 %254 }
  0xc2   :  { %v453_v40 = vsub.f32 %v437_v5, %v377_v8  ;;  %v439_v55 = vmul.f32 %v255_v44, %v255_v44 }
  0xc4   :  { %v469_v57 = vmul.f32 0.5, %v453_v40  ;;  %v556_v40 = vadd.s32 4294967248, %v1073_v54 }
  0xc5   :  { %v142_v12 = vpop.xlane.xlu1 %141  ;;  %v139_v18 = vpop.xlane.xlu0 %138 }
  0xc6   :  { %v420_v17 = vadd.f32 %v1079_v59, %v142_v12  ;;  %v419_v27 = vadd.f32 %v1079_v59, %v139_v18 }
  0xc8   :  { %v484_v41 = vadd.f32 %v468_v19, %v420_v17  ;;  %v483_v13 = vadd.f32 %v467_v25, %v419_v27  ;;  %v559_v25 = vsub.s32 %v556_v40, %v752_v1 }
  0xc9   :  { %v380_v23 = vpop.xlane.xlu1 %379  ;;  %v258_v28 = vpop.xlane.xlu0 %257 }
  0xca   :  { %v525_v2 = vrot.slane %v484_v41, %v524_v11  ;;  %v520_v29 = vrot.slane %v483_v13, %v519_v0  ;;  %v454_v33 = vsub.f32 %v438_v4, %v380_v23  ;;  %v440_v26 = vmul.f32 %v258_v28, %v258_v28 }
  0xcb   :  { %v563_v23 = vadd.s32 4294967240, %v1073_v54 }
  0xcc   :  { %v527_v50 = vsel %vm526_vm1, %v525_v2, %v520_v29  ;;  %v470_v61 = vmul.f32 0.5, %v454_v33 }
  0xcd   :  { %v261_v46 = vpop.xlane.xlu1 %260  ;;  %v145_v47 = vpop.xlane.xlu0 %144 }
  0xce   :  { %v421_v20 = vadd.f32 %v1079_v59, %v145_v47  ;;  %v441_v63 = vmul.f32 %v261_v46, %v261_v46 }
  0xd0   :  { %v485_v49 = vadd.f32 %v469_v57, %v421_v20  ;;  %v570_v20 = vadd.s32 4294967232, %v1073_v54 }
  0xd1   :  { %v148_v52 = vpop.xlane.xlu1 %147  ;;  %v383_v10 = vpop.xlane.xlu0 %382 }
  0xd2   :  { %v532_v58 = vrot.slane %v485_v49, %v531_v51  ;;  %v422_v24 = vadd.f32 %v1079_v59, %v148_v52  ;;  %v455_v56 = vsub.f32 %v439_v55, %v383_v10 }
  0xd4   :  { %v534_v34 = vsel %vm533_vm2, %v532_v58, %v527_v50  ;;  %v486_v53 = vadd.f32 %v470_v61, %v422_v24  ;;  %v471_v14 = vmul.f32 0.5, %v455_v56  ;;  %v566_v50 = vsub.s32 %v563_v23, %v752_v1 }
  0xd5   :  { %v386_v38 = vpop.xlane.xlu1 %385  ;;  %v264_v30 = vpop.xlane.xlu0 %263 }
  0xd6   :  { %v539_v37 = vrot.slane %v486_v53, %v538_v60  ;;  %v456_v15 = vsub.f32 %v440_v26, %v386_v38  ;;  %v442_v0 = vmul.f32 %v264_v30, %v264_v30  ;;  %v573_v60 = vsub.s32 %v570_v20, %v752_v1 }
  0xd7   :  { %v577_v38 = vadd.s32 4294967224, %v1073_v54 }
  0xd8   :  { %v541_v31 = vsel %vm540_vm3, %v539_v37, %v534_v34  ;;  %v472_v35 = vmul.f32 0.5, %v456_v15 }
  0xd9   :  { %v267_v16 = vpop.xlane.xlu1 %266  ;;  %v151_v7 = vpop.xlane.xlu0 %150 }
  0xda   :  { %v423_v22 = vadd.f32 %v1079_v59, %v151_v7  ;;  %v443_v47 = vmul.f32 %v267_v16, %v267_v16 }
  0xdc   :  { %v487_v43 = vadd.f32 %v471_v14, %v423_v22  ;;  %v584_v22 = vadd.s32 4294967216, %v1073_v54 }
  0xdd   :  { %v154_v48 = vpop.xlane.xlu1 %153  ;;  %v389_v6 = vpop.xlane.xlu0 %388 }
  0xde   :  { %v546_v3 = vrot.slane %v487_v43, %v545_v21  ;;  %v424_v62 = vadd.f32 %v1079_v59, %v154_v48  ;;  %v457_v12 = vsub.f32 %v441_v63, %v389_v6 }
  0xe0   :  { %v548_v5 = vsel %vm547_vm4, %v546_v3, %v541_v31  ;;  %v488_v8 = vadd.f32 %v472_v35, %v424_v62  ;;  %v473_v27 = vmul.f32 0.5, %v457_v12  ;;  %v580_v31 = vsub.s32 %v577_v38, %v752_v1 }
  0xe1   :  { %v392_v44 = vpop.xlane.xlu1 %391  ;;  %v270_v39 = vpop.xlane.xlu0 %269 }
  0xe2   :  { %v553_v11 = vrot.slane %v488_v8, %v552_v36  ;;  %v458_v41 = vsub.f32 %v442_v0, %v392_v44  ;;  %v444_v10 = vmul.f32 %v270_v39, %v270_v39  ;;  %v587_v36 = vsub.s32 %v584_v22, %v752_v1 }
  0xe3   :  { %v591_v44 = vadd.s32 4294967208, %v1073_v54 }
  0xe4   :  { %v555_v18 = vsel %vm554_vm5, %v553_v11, %v548_v5  ;;  %v474_v32 = vmul.f32 0.5, %v458_v41 }
  0xe5   :  { %v273_v19 = vpop.xlane.xlu1 %272  ;;  %v157_v17 = vpop.xlane.xlu0 %156 }
  0xe6   :  { %v425_v13 = vadd.f32 %v1079_v59, %v157_v17  ;;  %v445_v7 = vmul.f32 %v273_v19, %v273_v19 }
  0xe8   :  { %v489_v28 = vadd.f32 %v473_v27, %v425_v13 }
  0xe9   :  { %v160_v2 = vpop.xlane.xlu1 %159  ;;  %v395_v29 = vpop.xlane.xlu0 %394 }
  0xea   :  { %v560_v4 = vrot.slane %v489_v28, %v559_v25  ;;  %v426_v46 = vadd.f32 %v1079_v59, %v160_v2  ;;  %v459_v52 = vsub.f32 %v443_v47, %v395_v29  ;;  %v598_v2 = vadd.s32 4294967200, %v1073_v54 }
  0xec   :  { %v562_v9 = vsel %vm561_vm6, %v560_v4, %v555_v18  ;;  %v490_v57 = vadd.f32 %v474_v32, %v426_v46  ;;  %v475_v55 = vmul.f32 0.5, %v459_v52  ;;  %v594_v18 = vsub.s32 %v591_v44, %v752_v1 }
  0xed   :  { %v398_v33 = vpop.xlane.xlu1 %397  ;;  %v276_v51 = vpop.xlane.xlu0 %275  ;;  %v605_v46 = vadd.s32 4294967192, %v1073_v54 }
  0xee   :  { %v567_v49 = vrot.slane %v490_v57, %v566_v50  ;;  %v460_v34 = vsub.f32 %v444_v10, %v398_v33  ;;  %v446_v6 = vmul.f32 %v276_v51, %v276_v51  ;;  %v601_v57 = vsub.s32 %v598_v2, %v752_v1 }
  0xf0   :  { %v569_v61 = vsel %vm568_vm7, %v567_v49, %v562_v9  ;;  %v476_v45 = vmul.f32 0.5, %v460_v34 }
  0xf1   :  { %v279_v58 = vpop.xlane.xlu1 %278  ;;  %v163_v24 = vpop.xlane.xlu0 %162 }
  0xf2   :  { %v427_v53 = vadd.f32 %v1079_v59, %v163_v24  ;;  %v447_v25 = vmul.f32 %v279_v58, %v279_v58  ;;  %v612_v24 = vadd.s32 4294967184, %v1073_v54 }
  0xf4   :  { %v491_v30 = vadd.f32 %v475_v55, %v427_v53 }
  0xf5   :  { %v166_v37 = vpop.xlane.xlu1 %165  ;;  %v401_v56 = vpop.xlane.xlu0 %400 }
  0xf6   :  { %v574_v26 = vrot.slane %v491_v30, %v573_v60  ;;  %v428_v16 = vadd.f32 %v1079_v59, %v166_v37  ;;  %v461_v48 = vsub.f32 %v445_v7, %v401_v56  ;;  %v619_v60 = vadd.s32 4294967176, %v1073_v54 }
  0xf8   :  { %v576_v42 = vsel %vm575_vm8, %v574_v26, %v569_v61  ;;  %v492_v14 = vadd.f32 %v476_v45, %v428_v16  ;;  %v477_v63 = vmul.f32 0.5, %v461_v48  ;;  %v608_v61 = vsub.s32 %v605_v46, %v752_v1 }
  0xf9   :  { %v404_v15 = vpop.xlane.xlu1 %403  ;;  %v282_v21 = vpop.xlane.xlu0 %281  ;;  %v622_v45 = vsub.s32 %v619_v60, %v752_v1 }
  0xfa   :  { %v581_v43 = vrot.slane %v492_v14, %v580_v31  ;;  %v462_v5 = vsub.f32 %v446_v6, %v404_v15  ;;  %v448_v29 = vmul.f32 %v282_v21, %v282_v21  ;;  %v615_v31 = vsub.s32 %v612_v24, %v752_v1 }
  0xfc   :  { %v583_v35 = vsel %vm582_vm9, %v581_v43, %v576_v42  ;;  %v478_v12 = vmul.f32 0.5, %v462_v5 }
  0xfd   :  { %v285_v3 = vpop.xlane.xlu1 %284  ;;  %v169_v62 = vpop.xlane.xlu0 %168 }
  0xfe   :  { %v429_v8 = vadd.f32 %v1079_v59, %v169_v62  ;;  %v449_v51 = vmul.f32 %v285_v3, %v285_v3 }
 0x100   :  { %v493_v39 = vadd.f32 %v477_v63, %v429_v8 }
 0x101   :  { %v172_v40 = vpop.xlane.xlu1 %171  ;;  %v407_v11 = vpop.xlane.xlu0 %406 }
 0x102   :  { %v588_v0 = vrot.slane %v493_v39, %v587_v36  ;;  %v430_v19 = vadd.f32 %v1079_v59, %v172_v40  ;;  %v463_v28 = vsub.f32 %v447_v25, %v407_v11 }
 0x104   :  { %v590_v17 = vsel %vm589_vm10, %v588_v0, %v583_v35  ;;  %v494_v27 = vadd.f32 %v478_v12, %v430_v19  ;;  %v479_v47 = vmul.f32 0.5, %v463_v28 }
 0x105   :  { %v410_v41 = vpop.xlane.xlu1 %409  ;;  %v288_v13 = vpop.xlane.xlu0 %287 }
 0x106   :  { %v595_v23 = vrot.slane %v494_v27, %v594_v18  ;;  %v464_v9 = vsub.f32 %v448_v29, %v410_v41  ;;  %v450_v20 = vmul.f32 %v288_v13, %v288_v13 }
 0x108   :  { %v597_v32 = vsel %vm596_vm11, %v595_v23, %v590_v17  ;;  %v480_v55 = vmul.f32 0.5, %v464_v9 }
 0x109   :  { %v413_v4 = vpop.xlane.xlu1 %412  ;;  %v175_v50 = vpop.xlane.xlu0 %174 }
 0x10a   :  { %v431_v33 = vadd.f32 %v1079_v59, %v175_v50  ;;  %v465_v52 = vsub.f32 %v449_v51, %v413_v4 }
 0x10c   :  { %v495_v49 = vadd.f32 %v479_v47, %v431_v33  ;;  %v481_v56 = vmul.f32 0.5, %v465_v52 }
 0x10d   :  { %v416_v10 = vpop.xlane.xlu1 %415  ;;  %v178_v58 = vpop.xlane.xlu0 %177 }
 0x10e   :  { %v602_v34 = vrot.slane %v495_v49, %v601_v57  ;;  %v466_v53 = vsub.f32 %v450_v20, %v416_v10  ;;  %v432_v38 = vadd.f32 %v1079_v59, %v178_v58 }
 0x110   :  { %v604_v30 = vsel %vm603_vm12, %v602_v34, %v597_v32  ;;  %v496_v37 = vadd.f32 %v480_v55, %v432_v38  ;;  %v482_v7 = vmul.f32 0.5, %v466_v53 }
 0x111   :  { %v184_v26 = vpop.xlane.xlu1 %183  ;;  %v181_v16 = vpop.xlane.xlu0 %180 }
 0x112   :  { %v609_v42 = vrot.slane %v496_v37, %v608_v61  ;;  %v434_v14 = vadd.f32 %v1079_v59, %v184_v26  ;;  %v433_v54 = vadd.f32 %v1079_v59, %v181_v16 }
 0x114   :  { %v498_v15 = vadd.f32 %v482_v7, %v434_v14  ;;  %v497_v21 = vadd.f32 %v481_v56, %v433_v54  ;;  %v611_v22 = vsel %vm610_vm13, %v609_v42, %v604_v30 }
 0x116   :  { %v623_v43 = vrot.slane %v498_v15, %v622_v45  ;;  %v616_v48 = vrot.slane %v497_v21, %v615_v31 }
 0x118   :  { %v618_v6 = vsel %vm617_vm14, %v616_v48, %v611_v22 }
 0x119   :  { %v625_v1 = vsel %vm624_vm15, %v623_v43, %v618_v6 }
 0x11a   :  { %627 = vst [vmem:[#allocation8] sm:$0x1] %v625_v1 }
 0x11b   :  { %700 = shalt.err (!%p697_p0)
}
 0x11c   :  { %637 = dma.vmem_to_hbm [thread:$0]  %s635_s30, 16, %s1135_s4, [#allocation5]  }
 0x11d   :  { %713 = dma.done.wait [#allocation5], 16  }
 0x11e   :  { %714 = vsyncadd [#allocation5], 4294967280 }
 0x11f   :  { %641 = vsyncpa [#allocation4], 1 }
 0x120   :  { %642 = vsyncpa [#allocation7], 1 }
 0x121   :  { %643 = vsyncpa [#allocation5], 1 }

</bundles_post_ra>
